<compile_context>
chip_gen: v6e
topology: v6e:2x2x1
jax: 0.10.0
libtpu: 0.0.40
codegen_flags: <defaults>
</compile_context>

<pallas_src>
import functools

import jax
import jax.numpy as jnp
from jax.experimental import pallas as pl
from jax.experimental.pallas import tpu as pltpu

LEAKY_SLOPE = 0.01
BN_EPS = 1e-5
VMEM_LIMIT_BYTES = 32 * 1024 * 1024      # safe scoped limit on v5e/v6e/v7x
VMEM_TILE_BUDGET = 24 * 1024 * 1024      # leave headroom below the limit


def _round_up(a, b):
    return (a + b - 1) // b * b


def _leaky_relu(x):
    return jnp.where(x > 0, x, LEAKY_SLOPE * x)


def _pick_row_tile(n, dp, hp, budget_bytes):
    """Largest row tile (multiple of 16) whose per-step VMEM footprint fits."""
    tm = min(512, _round_up(n, 16))
    while tm > 16:
        est = (2 * (tm * dp * 2 + tm * dp * 4)   # double-buffered x-in(bf16)+h2-out(f32)
               + 2 * (dp * hp + hp * dp)         # resident bf16 weights
               + tm * hp * 4 + tm * dp * 4       # live f32 h1 / h2 temporaries
               + (1 << 20))                      # slack
        if est <= budget_bytes:
            break
        tm = _round_up(tm // 2, 16)
    return max(tm, 16)


# ----------------------------- pass 1 kernel --------------------------------
def _fwd_stats_kernel(x_ref, w1_ref, b1_ref, w2_ref, b2_ref,
                      h2_ref, stats_ref, *, n_valid, row_tile, mask_rows):
    x = x_ref[...]                                                      # [TM, Dp] bf16
    h1 = jnp.dot(x, w1_ref[...], preferred_element_type=jnp.float32)   # [TM, Hp] f32
    h1 = _leaky_relu(h1 + b1_ref[...])
    h2 = jnp.dot(h1.astype(jnp.bfloat16), w2_ref[...],
                 preferred_element_type=jnp.float32)                   # [TM, Dp] f32
    h2 = _leaky_relu(h2 + b2_ref[...])
    h2_ref[...] = h2

    if mask_rows:
        row = (jax.lax.broadcasted_iota(jnp.int32, h2.shape, 0)
               + pl.program_id(0) * row_tile)
        valid = row < n_valid
        hs = jnp.where(valid, h2, 0.0)
        hq = jnp.where(valid, h2 * h2, 0.0)
    else:
        hs = h2
        hq = h2 * h2

    s = jnp.sum(hs, axis=0, keepdims=True)       # (1, Dp)
    ss = jnp.sum(hq, axis=0, keepdims=True)      # (1, Dp)
    stats_ref[...] = jnp.concatenate([s, ss], axis=0)[None]  # (1, 2, Dp)


# ----------------------------- pass 2 kernel --------------------------------
def _bn_apply_kernel(h2_ref, scale_ref, shift_ref, o_ref):
    o_ref[...] = (h2_ref[...] * scale_ref[...] + shift_ref[...]).astype(o_ref.dtype)


# ------------------------------- wrapper ------------------------------------
def attribute_filter(x, w1, b1, w2, b2, gamma, beta):
    """x: [N, D] f32; w1: [D, 2D]; b1: [1, 2D]; w2: [2D, D]; b2,gamma,beta: [1, D]."""
    N, D = x.shape
    H = w1.shape[1]

    Dp = _round_up(D, 128)
    Hp = _round_up(H, 128)
    TM = _pick_row_tile(N, Dp, Hp, VMEM_TILE_BUDGET)
    Np = _round_up(N, TM)
    num_tiles = Np // TM
    mask_rows = Np != N

    # Pad to lane-dense feature dims / row-tile multiple; cast MXU operands to bf16.
    xp = jnp.pad(x, ((0, Np - N), (0, Dp - D))).astype(jnp.bfloat16)
    w1p = jnp.pad(w1, ((0, Dp - D), (0, Hp - H))).astype(jnp.bfloat16)
    b1p = jnp.pad(b1, ((0, 0), (0, Hp - H))).astype(jnp.float32)
    w2p = jnp.pad(w2, ((0, Hp - H), (0, Dp - D))).astype(jnp.bfloat16)
    b2p = jnp.pad(b2, ((0, 0), (0, Dp - D))).astype(jnp.float32)
    gp = jnp.pad(gamma, ((0, 0), (0, Dp - D))).astype(jnp.float32)
    bp = jnp.pad(beta, ((0, 0), (0, Dp - D))).astype(jnp.float32)

    cparams = pltpu.CompilerParams(
        dimension_semantics=("parallel",),
        vmem_limit_bytes=VMEM_LIMIT_BYTES,
    )

    # ---- Pass 1: h2 tiles + per-tile partial (sum, sum-of-squares) ----
    kernel1 = functools.partial(_fwd_stats_kernel,
                                n_valid=N, row_tile=TM, mask_rows=mask_rows)
    h2, stats = pl.pallas_call(
        kernel1,
        out_shape=(jax.ShapeDtypeStruct((Np, Dp), jnp.float32),
                   jax.ShapeDtypeStruct((num_tiles, 2, Dp), jnp.float32)),
        grid=(num_tiles,),
        in_specs=[
            pl.BlockSpec((TM, Dp), lambda i: (i, 0)),   # x tile
            pl.BlockSpec((Dp, Hp), lambda i: (0, 0)),   # W1 (resident)
            pl.BlockSpec((1, Hp), lambda i: (0, 0)),    # b1
            pl.BlockSpec((Hp, Dp), lambda i: (0, 0)),   # W2 (resident)
            pl.BlockSpec((1, Dp), lambda i: (0, 0)),    # b2
        ],
        out_specs=(
            pl.BlockSpec((TM, Dp), lambda i: (i, 0)),       # h2 tile
            pl.BlockSpec((1, 2, Dp), lambda i: (i, 0, 0)),  # per-tile stats
        ),
        compiler_params=cparams,
    )(xp, w1p, b1p, w2p, b2p)

    # ---- Finalize batch statistics (tiny [1, Dp] work) ----
    ssum = jnp.sum(stats[:, 0, :], axis=0, keepdims=True)
    ssq = jnp.sum(stats[:, 1, :], axis=0, keepdims=True)
    mean = ssum / N
    var = jnp.maximum(ssq / N - mean * mean, 0.0)
    scale = gp * jax.lax.rsqrt(var + BN_EPS)     # gamma * inv_std folded
    shift = bp - mean * scale

    # ---- Pass 2: fused BN apply ----
    out = pl.pallas_call(
        _bn_apply_kernel,
        out_shape=jax.ShapeDtypeStruct((Np, Dp), jnp.float32),
        grid=(num_tiles,),
        in_specs=[
            pl.BlockSpec((TM, Dp), lambda i: (i, 0)),
            pl.BlockSpec((1, Dp), lambda i: (0, 0)),
            pl.BlockSpec((1, Dp), lambda i: (0, 0)),
        ],
        out_specs=pl.BlockSpec((TM, Dp), lambda i: (i, 0)),
        compiler_params=cparams,
    )(h2, scale, shift)

    return out[:N, :D]


def init_params(key, embed_dim):
    """Deterministic synthetic init mimicking nn.Linear default (uniform +-1/sqrt(fan_in))."""
    D = embed_dim
    H = 2 * embed_dim
    k1, k2, k3, k4 = jax.random.split(key, 4)
    lim1 = 1.0 / jnp.sqrt(D)
    lim2 = 1.0 / jnp.sqrt(H)
    w1 = jax.random.uniform(k1, (D, H), jnp.float32, -lim1, lim1)   # stored as [in, out]
    b1 = jax.random.uniform(k2, (1, H), jnp.float32, -lim1, lim1)
    w2 = jax.random.uniform(k3, (H, D), jnp.float32, -lim2, lim2)
    b2 = jax.random.uniform(k4, (1, D), jnp.float32, -lim2, lim2)
    gamma = jnp.ones((1, D), jnp.float32)   # BatchNorm1d default weight
    beta = jnp.zeros((1, D), jnp.float32)   # BatchNorm1d default bias
    return w1, b1, w2, b2, gamma, beta


if __name__ == "__main__":
    key = jax.random.PRNGKey(0)
    kx, kp = jax.random.split(key)

    N, D = 8, 32                       # batch=8, embed_dim=32
    x = jax.random.normal(kx, (N, D), jnp.float32)
    w1, b1, w2, b2, gamma, beta = init_params(kp, D)

    fn = jax.jit(attribute_filter)
    out = fn(x, w1, b1, w2, b2, gamma, beta)
    out = jax.block_until_ready(out)

    # Reference in plain JAX, matching the kernel's bf16-operand / f32-accumulate
    # matmul path and training-mode batchnorm semantics.
    xb, w1b, w2b = x.astype(jnp.bfloat16), w1.astype(jnp.bfloat16), w2.astype(jnp.bfloat16)
    h1 = jnp.dot(xb, w1b, preferred_element_type=jnp.float32) + b1
    h1 = jnp.where(h1 > 0, h1, 0.01 * h1)
    h2 = jnp.dot(h1.astype(jnp.bfloat16), w2b, preferred_element_type=jnp.float32) + b2
    h2 = jnp.where(h2 > 0, h2, 0.01 * h2)
    mean = jnp.mean(h2, axis=0, keepdims=True)
    var = jnp.mean((h2 - mean) ** 2, axis=0, keepdims=True)
    ref = gamma * (h2 - mean) * jax.lax.rsqrt(var + BN_EPS) + beta

    assert out.shape == (N, D)
    assert bool(jnp.all(jnp.isfinite(out)))
    assert float(jnp.max(jnp.abs(out - ref))) < 2e-3

    print("KERNEL_OK")
</pallas_src>

<mosaic_0001>
module attributes {stable_mosaic.version = 11 : i64} {
  func.func @_fwd_stats_kernel(%arg0: i32, %arg1: memref<16x128xbf16, #tpu.memory_space<vmem>>, %arg2: memref<128x128xbf16, #tpu.memory_space<vmem>>, %arg3: memref<1x128xf32, #tpu.memory_space<vmem>>, %arg4: memref<128x128xbf16, #tpu.memory_space<vmem>>, %arg5: memref<1x128xf32, #tpu.memory_space<vmem>>, %arg6: memref<16x128xf32, #tpu.memory_space<vmem>>, %arg7: memref<1x2x128xf32, #tpu.memory_space<vmem>>) attributes {dimension_semantics = [#tpu.dimension_semantics<parallel>], iteration_bounds = array<i64: 1>, scalar_prefetch = 0 : i64, scratch_operands = 0 : i64, tpu.core_type = #tpu.core_type<tc>, window_params = [{transform_indices = @transform_0, window_bounds = array<i64: 16, 128>}, {pipeline_mode = #tpu.pipeline_mode<synchronous>, transform_indices = @transform_1, window_bounds = array<i64: 128, 128>}, {pipeline_mode = #tpu.pipeline_mode<synchronous>, transform_indices = @transform_2, window_bounds = array<i64: 1, 128>}, {pipeline_mode = #tpu.pipeline_mode<synchronous>, transform_indices = @transform_3, window_bounds = array<i64: 128, 128>}, {pipeline_mode = #tpu.pipeline_mode<synchronous>, transform_indices = @transform_4, window_bounds = array<i64: 1, 128>}, {transform_indices = @transform_5, window_bounds = array<i64: 16, 128>}, {transform_indices = @transform_6, window_bounds = array<i64: 1, 2, 128>}]} {
    %c0 = arith.constant 0 : index
    %c0_0 = arith.constant 0 : index
    %0 = vector.load %arg1[%c0, %c0_0] : memref<16x128xbf16, #tpu.memory_space<vmem>>, vector<16x128xbf16>
    %c0_1 = arith.constant 0 : index
    %c0_2 = arith.constant 0 : index
    %1 = vector.load %arg2[%c0_1, %c0_2] : memref<128x128xbf16, #tpu.memory_space<vmem>>, vector<128x128xbf16>
    %cst = arith.constant dense<0.000000e+00> : vector<16x128xf32>
    %2 = tpu.matmul %0, %1, %cst {dimension_numbers = #tpu.dot_dimension_numbers<[1], [0], [0], [1], [0, 0, 1, 1], [], []>} : vector<16x128xbf16>, vector<128x128xbf16>, vector<16x128xf32> -> vector<16x128xf32>
    %c0_3 = arith.constant 0 : index
    %c0_4 = arith.constant 0 : index
    %3 = vector.load %arg3[%c0_3, %c0_4] : memref<1x128xf32, #tpu.memory_space<vmem>>, vector<1x128xf32>
    %4 = vector.broadcast %3 : vector<1x128xf32> to vector<16x128xf32>
    %5 = arith.addf %2, %4 : vector<16x128xf32>
    %cst_5 = arith.constant 0.000000e+00 : f32
    %6 = vector.broadcast %cst_5 : f32 to vector<16x128xf32>
    %7 = arith.cmpf ogt, %5, %6 : vector<16x128xf32>
    %cst_6 = arith.constant 0.00999999977 : f32
    %8 = vector.broadcast %cst_6 : f32 to vector<16x128xf32>
    %9 = arith.mulf %8, %5 : vector<16x128xf32>
    %10 = arith.select %7, %5, %9 : vector<16x128xi1>, vector<16x128xf32>
    %11 = arith.truncf %10 : vector<16x128xf32> to vector<16x128xbf16>
    %c0_7 = arith.constant 0 : index
    %c0_8 = arith.constant 0 : index
    %12 = vector.load %arg4[%c0_7, %c0_8] : memref<128x128xbf16, #tpu.memory_space<vmem>>, vector<128x128xbf16>
    %cst_9 = arith.constant dense<0.000000e+00> : vector<16x128xf32>
    %13 = tpu.matmul %11, %12, %cst_9 {dimension_numbers = #tpu.dot_dimension_numbers<[1], [0], [0], [1], [0, 0, 1, 1], [], []>} : vector<16x128xbf16>, vector<128x128xbf16>, vector<16x128xf32> -> vector<16x128xf32>
    %c0_10 = arith.constant 0 : index
    %c0_11 = arith.constant 0 : index
    %14 = vector.load %arg5[%c0_10, %c0_11] : memref<1x128xf32, #tpu.memory_space<vmem>>, vector<1x128xf32>
    %15 = vector.broadcast %14 : vector<1x128xf32> to vector<16x128xf32>
    %16 = arith.addf %13, %15 : vector<16x128xf32>
    %cst_12 = arith.constant 0.000000e+00 : f32
    %17 = vector.broadcast %cst_12 : f32 to vector<16x128xf32>
    %18 = arith.cmpf ogt, %16, %17 : vector<16x128xf32>
    %cst_13 = arith.constant 0.00999999977 : f32
    %19 = vector.broadcast %cst_13 : f32 to vector<16x128xf32>
    %20 = arith.mulf %19, %16 : vector<16x128xf32>
    %21 = arith.select %18, %16, %20 : vector<16x128xi1>, vector<16x128xf32>
    %c0_14 = arith.constant 0 : index
    %c0_15 = arith.constant 0 : index
    %22 = vector.load %arg6[%c0_14, %c0_15] : memref<16x128xf32, #tpu.memory_space<vmem>>, vector<16x128xf32>
    tpu.vector_store %arg6[%c0_14, %c0_15], %21 {strides = array<i32>} : memref<16x128xf32, #tpu.memory_space<vmem>>, vector<16x128xf32>,
    %23 = tpu.iota {dimensions = array<i32: 0>} : vector<16x128xi32>
    %c16_i32 = arith.constant 16 : i32
    %24 = arith.muli %arg0, %c16_i32 : i32
    %25 = vector.broadcast %24 : i32 to vector<16x128xi32>
    %26 = arith.addi %23, %25 : vector<16x128xi32>
    %c8_i32 = arith.constant 8 : i32
    %27 = vector.broadcast %c8_i32 : i32 to vector<16x128xi32>
    %28 = arith.cmpi slt, %26, %27 : vector<16x128xi32>
    %cst_16 = arith.constant 0.000000e+00 : f32
    %29 = vector.broadcast %cst_16 : f32 to vector<16x128xf32>
    %30 = arith.select %28, %21, %29 : vector<16x128xi1>, vector<16x128xf32>
    %31 = arith.mulf %21, %21 : vector<16x128xf32>
    %cst_17 = arith.constant 0.000000e+00 : f32
    %32 = vector.broadcast %cst_17 : f32 to vector<16x128xf32>
    %33 = arith.select %28, %31, %32 : vector<16x128xi1>, vector<16x128xf32>
    %cst_18 = arith.constant dense<0.000000e+00> : vector<128xf32>
    %34 = vector.multi_reduction <add>, %30, %cst_18 [0] : vector<16x128xf32> to vector<128xf32>
    %35 = vector.shape_cast %34 : vector<128xf32> to vector<1x128xf32>
    %cst_19 = arith.constant dense<0.000000e+00> : vector<128xf32>
    %36 = vector.multi_reduction <add>, %33, %cst_19 [0] : vector<16x128xf32> to vector<128xf32>
    %37 = vector.shape_cast %36 : vector<128xf32> to vector<1x128xf32>
    %38 = tpu.concatenate %35, %37 in 0 : vector<1x128xf32>, vector<1x128xf32> -> vector<2x128xf32>
    %39 = vector.shape_cast %38 : vector<2x128xf32> to vector<1x2x128xf32>
    %c0_20 = arith.constant 0 : index
    %c0_21 = arith.constant 0 : index
    %c0_22 = arith.constant 0 : index
    %40 = vector.load %arg7[%c0_20, %c0_21, %c0_22] : memref<1x2x128xf32, #tpu.memory_space<vmem>>, vector<1x2x128xf32>
    tpu.vector_store %arg7[%c0_20, %c0_21, %c0_22], %39 {strides = array<i32>} : memref<1x2x128xf32, #tpu.memory_space<vmem>>, vector<1x2x128xf32>,
    return
  }
  func.func @transform_0(%arg0: i32) -> (i32, i32) {
    %c0_i32 = arith.constant 0 : i32
    %c0_i32_0 = arith.constant 0 : i32
    return %arg0, %c0_i32 : i32, i32
  }
  func.func @transform_1(%arg0: i32) -> (i32, i32) {
    %c0_i32 = arith.constant 0 : i32
    %c0_i32_0 = arith.constant 0 : i32
    %c0_i32_1 = arith.constant 0 : i32
    return %c0_i32, %c0_i32_0 : i32, i32
  }
  func.func @transform_2(%arg0: i32) -> (i32, i32) {
    %c0_i32 = arith.constant 0 : i32
    %c0_i32_0 = arith.constant 0 : i32
    %c0_i32_1 = arith.constant 0 : i32
    return %c0_i32, %c0_i32_0 : i32, i32
  }
  func.func @transform_3(%arg0: i32) -> (i32, i32) {
    %c0_i32 = arith.constant 0 : i32
    %c0_i32_0 = arith.constant 0 : i32
    %c0_i32_1 = arith.constant 0 : i32
    return %c0_i32, %c0_i32_0 : i32, i32
  }
  func.func @transform_4(%arg0: i32) -> (i32, i32) {
    %c0_i32 = arith.constant 0 : i32
    %c0_i32_0 = arith.constant 0 : i32
    %c0_i32_1 = arith.constant 0 : i32
    return %c0_i32, %c0_i32_0 : i32, i32
  }
  func.func @transform_5(%arg0: i32) -> (i32, i32) {
    %c0_i32 = arith.constant 0 : i32
    %c0_i32_0 = arith.constant 0 : i32
    return %arg0, %c0_i32 : i32, i32
  }
  func.func @transform_6(%arg0: i32) -> (i32, i32, i32) {
    %c0_i32 = arith.constant 0 : i32
    %c0_i32_0 = arith.constant 0 : i32
    %c0_i32_1 = arith.constant 0 : i32
    return %arg0, %c0_i32, %c0_i32_0 : i32, i32, i32
  }
}

module attributes {stable_mosaic.version = 11 : i64} {
  func.func @_bn_apply_kernel(%arg0: i32, %arg1: memref<16x128xf32, #tpu.memory_space<vmem>>, %arg2: memref<1x128xf32, #tpu.memory_space<vmem>>, %arg3: memref<1x128xf32, #tpu.memory_space<vmem>>, %arg4: memref<16x128xf32, #tpu.memory_space<vmem>>) attributes {dimension_semantics = [#tpu.dimension_semantics<parallel>], iteration_bounds = array<i64: 1>, scalar_prefetch = 0 : i64, scratch_operands = 0 : i64, tpu.core_type = #tpu.core_type<tc>, window_params = [{transform_indices = @transform_0, window_bounds = array<i64: 16, 128>}, {pipeline_mode = #tpu.pipeline_mode<synchronous>, transform_indices = @transform_1, window_bounds = array<i64: 1, 128>}, {pipeline_mode = #tpu.pipeline_mode<synchronous>, transform_indices = @transform_2, window_bounds = array<i64: 1, 128>}, {transform_indices = @transform_3, window_bounds = array<i64: 16, 128>}]} {
    %c0 = arith.constant 0 : index
    %c0_0 = arith.constant 0 : index
    %0 = vector.load %arg1[%c0, %c0_0] : memref<16x128xf32, #tpu.memory_space<vmem>>, vector<16x128xf32>
    %c0_1 = arith.constant 0 : index
    %c0_2 = arith.constant 0 : index
    %1 = vector.load %arg2[%c0_1, %c0_2] : memref<1x128xf32, #tpu.memory_space<vmem>>, vector<1x128xf32>
    %2 = vector.broadcast %1 : vector<1x128xf32> to vector<16x128xf32>
    %3 = arith.mulf %0, %2 : vector<16x128xf32>
    %c0_3 = arith.constant 0 : index
    %c0_4 = arith.constant 0 : index
    %4 = vector.load %arg3[%c0_3, %c0_4] : memref<1x128xf32, #tpu.memory_space<vmem>>, vector<1x128xf32>
    %5 = vector.broadcast %4 : vector<1x128xf32> to vector<16x128xf32>
    %6 = arith.addf %3, %5 : vector<16x128xf32>
    %c0_5 = arith.constant 0 : index
    %c0_6 = arith.constant 0 : index
    %7 = vector.load %arg4[%c0_5, %c0_6] : memref<16x128xf32, #tpu.memory_space<vmem>>, vector<16x128xf32>
    tpu.vector_store %arg4[%c0_5, %c0_6], %6 {strides = array<i32>} : memref<16x128xf32, #tpu.memory_space<vmem>>, vector<16x128xf32>,
    return
  }
  func.func @transform_0(%arg0: i32) -> (i32, i32) {
    %c0_i32 = arith.constant 0 : i32
    %c0_i32_0 = arith.constant 0 : i32
    return %arg0, %c0_i32 : i32, i32
  }
  func.func @transform_1(%arg0: i32) -> (i32, i32) {
    %c0_i32 = arith.constant 0 : i32
    %c0_i32_0 = arith.constant 0 : i32
    %c0_i32_1 = arith.constant 0 : i32
    return %c0_i32, %c0_i32_0 : i32, i32
  }
  func.func @transform_2(%arg0: i32) -> (i32, i32) {
    %c0_i32 = arith.constant 0 : i32
    %c0_i32_0 = arith.constant 0 : i32
    %c0_i32_1 = arith.constant 0 : i32
    return %c0_i32, %c0_i32_0 : i32, i32
  }
  func.func @transform_3(%arg0: i32) -> (i32, i32) {
    %c0_i32 = arith.constant 0 : i32
    %c0_i32_0 = arith.constant 0 : i32
    return %arg0, %c0_i32 : i32, i32
  }
}

</mosaic_0001>

<bundles_post_ra>
// kernel: attribute_filter.3
= control target key start
LH: loop header
LB: loop body
LE: loop exit
PB: predicated region body
PF: predicated region fallthrough
CT: control target
= control target key end

     0   :  { %s80_s0 = inlined_call_operand.vmem [shape: f32[16,128], index: 0, kind: input, shape index: {}]   ;;  %s81_s1 = inlined_call_operand.vmem [shape: f32[1,128], index: 1, kind: input, shape index: {}]   ;;  %s82_s2 = inlined_call_operand.vmem [shape: f32[1,128], index: 2, kind: input, shape index: {}]   ;;  %s83_s3 = inlined_call_operand.vmem [shape: f32[16,128], index: 3, kind: output, shape index: {}]  }
   0x1   :  { %v14_v0 = vld [vmem:[%s80_s0] sm:$0xff]  ;;  %v15_v4 = vld [vmem:[%s80_s0 + $0x8] sm:$0xff] }
   0x2   :  { %v40_v1 = vld [vmem:[%s81_s1] ss:$0 sm:$0xff] }
   0x3   :  { %v41_v2 = vld [vmem:[%s82_s2] ss:$0 sm:$0xff]  ;;  %v23_v3 = vmul.f32 %v40_v1, %v14_v0  ;;  %v24_v5 = vmul.f32 %v40_v1, %v15_v4 }
   0x5   :  { %v32_v6 = vadd.f32 %v41_v2, %v23_v3  ;;  %v33_v7 = vadd.f32 %v41_v2, %v24_v5 }
   0x7   :  { %34 = vst [vmem:[%s83_s3] sm:$0xff] %v32_v6  ;;  %35 = vst [vmem:[%s83_s3 + $0x8] sm:$0xff] %v33_v7 }

// kernel: attribute_filter.2
= control target key start
LH: loop header
LB: loop body
LE: loop exit
PB: predicated region body
PF: predicated region fallthrough
CT: control target
= control target key end

     0   :  { %v406_v0 = vmov 0.0   ;;  %vm407_vm0 = vmmov 0   ;;  %vm299_vm5 = vcmask 1040384   ;;  %s509_s1 = inlined_call_operand.vmem [shape: bf16[128,128], index: 1, kind: input, shape index: {}]   ;;  %s510_s3 = inlined_call_operand.vmem [shape: bf16[128,128], index: 3, kind: input, shape index: {}]   ;;  %s511_s0 = inlined_call_operand.vmem [shape: bf16[16,128], index: 0, kind: input, shape index: {}]   ;;  %s512_s2 = inlined_call_operand.vmem [shape: f32[1,128], index: 2, kind: input, shape index: {}]   ;;  %s513_s4 = inlined_call_operand.vmem [shape: f32[1,128], index: 4, kind: input, shape index: {}]   ;;  %s514_s5 = inlined_call_operand.vmem [shape: f32[16,128], index: 5, kind: output, shape index: {0}]   ;;  %s515_s6 = inlined_call_operand.vmem [shape: f32[1,2,128], index: 6, kind: output, shape index: {1}]  }
   0x1   :  { %347 = vmatprep.subr.bf16.mxu0 %v406_v0  ;;  %v389_v1 = vld [vmem:[%s509_s1 + $0x38] sm:$0xff]   ;;  %363 = vmatprep.mubr.msk.bf16.mxu0 %vm407_vm0, %v406_v0  ;;  %v390_v2 = vld [vmem:[%s509_s1 + $0x30] sm:$0xff]   ;;  %v391_v3 = vld [vmem:[%s509_s1 + $0x28] sm:$0xff]  }
   0x2   :  { %367 = vmatprep.subr.bf16.mxu1 %v406_v0  ;;  %383 = vmatprep.mubr.msk.bf16.mxu1 %vm407_vm0, %v406_v0  ;;  %v398_v4 = vld [vmem:[%s510_s3 + $0x38] sm:$0xff]   ;;  %v392_v5 = vld [vmem:[%s509_s1 + $0x20] sm:$0xff]   ;;  %v399_v6 = vld [vmem:[%s510_s3 + $0x30] sm:$0xff]  }
   0x3   :  { %348 = vmatpush3.bf16.msra.mxu0 %v389_v1  ;;  %368 = vmatpush3.bf16.msra.mxu1 %v398_v4  ;;  %v393_v7 = vld [vmem:[%s509_s1 + $0x18] sm:$0xff]   ;;  %v400_v8 = vld [vmem:[%s510_s3 + $0x28] sm:$0xff]   ;;  %v394_v9 = vld [vmem:[%s509_s1 + $0x10] sm:$0xff]  }
   0x4   :  { %349 = vmatprep.subr.bf16.mxu0 %v406_v0  ;;  %369 = vmatprep.subr.bf16.mxu1 %v406_v0  ;;  %v401_v10 = vld [vmem:[%s510_s3 + $0x20] sm:$0xff]   ;;  %v395_v11 = vld [vmem:[%s509_s1 + $0x8] sm:$0xff]   ;;  %v402_v12 = vld [vmem:[%s510_s3 + $0x18] sm:$0xff]  }
   0x5   :  { %v396_v13 = vld [vmem:[%s509_s1] sm:$0xff]   ;;  %v403_v15 = vld [vmem:[%s510_s3 + $0x10] sm:$0xff]   ;;  %v404_v16 = vld [vmem:[%s510_s3 + $0x8] sm:$0xff]  }
   0x6   :  { %v397_v14 = vld [vmem:[%s511_s0] sm:$0xff]  }
   0x7   :  { %350 = vmatpush3.bf16.msra.mxu0 %v390_v2  ;;  %370 = vmatpush3.bf16.msra.mxu1 %v399_v6  ;;  %v405_v17 = vld [vmem:[%s510_s3] sm:$0xff]  }
   0x8   :  { %351 = vmatprep.subr.bf16.mxu0 %v406_v0  ;;  %371 = vmatprep.subr.bf16.mxu1 %v406_v0  ;;  %v310_v18 = vld [vmem:[%s512_s2] ss:$0 sm:$0xff] }
   0x9   :  { %v320_v30 = vld [vmem:[%s513_s4] ss:$0 sm:$0xff] }
   0xb   :  { %352 = vmatpush3.bf16.msra.mxu0 %v391_v3  ;;  %372 = vmatpush3.bf16.msra.mxu1 %v400_v8 }
   0xc   :  { %353 = vmatprep.subr.bf16.mxu0 %v406_v0  ;;  %373 = vmatprep.subr.bf16.mxu1 %v406_v0 }
   0xf   :  { %354 = vmatpush3.bf16.msra.mxu0 %v392_v5  ;;  %374 = vmatpush3.bf16.msra.mxu1 %v401_v10 }
  0x10   :  { %355 = vmatprep.subr.bf16.mxu0 %v406_v0  ;;  %375 = vmatprep.subr.bf16.mxu1 %v406_v0 }
  0x13   :  { %356 = vmatpush3.bf16.msra.mxu0 %v393_v7  ;;  %376 = vmatpush3.bf16.msra.mxu1 %v402_v12 }
  0x14   :  { %357 = vmatprep.subr.bf16.mxu0 %v406_v0  ;;  %377 = vmatprep.subr.bf16.mxu1 %v406_v0 }
  0x17   :  { %358 = vmatpush3.bf16.msra.mxu0 %v394_v9  ;;  %378 = vmatpush3.bf16.msra.mxu1 %v403_v15 }
  0x18   :  { %359 = vmatprep.subr.bf16.mxu0 %v406_v0  ;;  %379 = vmatprep.subr.bf16.mxu1 %v406_v0 }
  0x1b   :  { %360 = vmatpush3.bf16.msra.mxu0 %v395_v11  ;;  %380 = vmatpush3.bf16.msra.mxu1 %v404_v16 }
  0x1c   :  { %361 = vmatprep.subr.bf16.mxu0 %v406_v0  ;;  %381 = vmatprep.subr.bf16.mxu1 %v406_v0 }
  0x1f   :  { %362 = vmatpush3.bf16.msra.mxu0 %v396_v13  ;;  %382 = vmatpush3.bf16.msra.mxu1 %v405_v17 }
  0x22   :  { %364 = vmatmul.mubr.bf16.vlgmr.msra.gmra.mxu0 %v397_v14 }
  0xe2   :  { %v136_v19 = vpop.f32.mrf.mxu0 }
  0xe3   :  { %v137_v20 = vadd.f32 %v310_v18, %v136_v19 }
  0xe4   :  { %v365_v21 = vpop.f32.mrf.mxu0 }
  0xe5   :  { %v145_v23 = vmul.f32 0.01, %v137_v20  ;;  %vm143_vm1 = vcmp.gt.f32.partialorder %v137_v20, 0.0 }
  0xe6   :  { %v139_v22 = vpop.f32.mrf.mxu0 }
  0xe7   :  { %v140_v24 = vadd.f32 %v310_v18, %v139_v22  ;;  %v147_v27 = vsel %vm143_vm1, %v137_v20, %v145_v23 }
  0xe8   :  { %v366_v25 = vpop.f32.mrf.mxu0 }
  0xe9   :  { %vm144_vm2 = vcmp.gt.f32.partialorder %v140_v24, 0.0  ;;  %v146_v26 = vmul.f32 0.01, %v140_v24 }
  0xeb   :  { %v148_v28 = vsel %vm144_vm2, %v140_v24, %v146_v26 }
  0xec   :  { %v149_v29 = vpack.c.bf16 %v148_v28, %v147_v27 }
  0xee   :  { %384 = vmatmul.mubr.bf16.vlgmr.msra.gmra.mxu1 %v149_v29 }
 0x1ae   :  { %v255_v31 = vpop.f32.mrf.mxu1 }
 0x1af   :  { %v256_v32 = vadd.f32 %v320_v30, %v255_v31 }
 0x1b0   :  { %v385_v33 = vpop.f32.mrf.mxu1 }
 0x1b1   :  { %vm262_vm3 = vcmp.gt.f32.partialorder %v256_v32, 0.0  ;;  %v264_v34 = vmul.f32 0.01, %v256_v32 }
 0x1b2   :  { %v258_v35 = vpop.f32.mrf.mxu1 }
 0x1b3   :  { %v266_v36 = vsel %vm262_vm3, %v256_v32, %v264_v34  ;;  %v259_v37 = vadd.f32 %v320_v30, %v258_v35 }
 0x1b4   :  { %v281_v38 = vmul.f32 %v266_v36, %v266_v36  ;;  %v286_v39 = vrot.slane %v266_v36, 4  ;;  %268 = vst [vmem:[%s514_s5] sm:$0xff] %v266_v36  ;;  %v386_v40 = vpop.f32.mrf.mxu1 }
 0x1b5   :  { %vm263_vm4 = vcmp.gt.f32.partialorder %v259_v37, 0.0  ;;  %v265_v41 = vmul.f32 0.01, %v259_v37 }
 0x1b6   :  { %v287_v42 = vadd.f32 %v286_v39, %v266_v36  ;;  %v293_v43 = vrot.slane %v281_v38, 4 }
 0x1b7   :  { %v267_v44 = vsel %vm263_vm4, %v259_v37, %v265_v41 }
 0x1b8   :  { %v288_v45 = vrot.slane %v287_v42, 2  ;;  %v294_v46 = vadd.f32 %v293_v43, %v281_v38  ;;  %269 = vst [vmem:[%s514_s5 + $0x8] sm:$0xff] %v267_v44 }
 0x1ba   :  { %v289_v47 = vadd.f32 %v288_v45, %v287_v42  ;;  %v295_v48 = vrot.slane %v294_v46, 2 }
 0x1bc   :  { %v290_v49 = vrot.slane %v289_v47, 1  ;;  %v296_v50 = vadd.f32 %v295_v48, %v294_v46 }
 0x1be   :  { %v297_v51 = vrot.slane %v296_v50, 1  ;;  %v291_v52 = vadd.f32 %v290_v49, %v289_v47 }
 0x1c0   :  { %v298_v53 = vadd.f32 %v297_v51, %v296_v50 }
 0x1c2   :  { %v300_v54 = vsel %vm299_vm5, %v291_v52, %v298_v53 }
 0x1c3   :  { %301 = vst [vmem:[%s515_s6] sm:$0x3] %v300_v54 }

</bundles_post_ra>
